<compile_context>
chip_gen: v7x
topology: tpu7x:2x2x1
jax: 0.10.0
libtpu: 0.0.40
codegen_flags: <defaults>
</compile_context>

<pallas_src>
import math

import jax
import jax.numpy as jnp
from jax.experimental import pallas as pl
from jax.experimental.pallas import tpu as pltpu


NUM_ENCODING_FUNCTIONS = 6
FILTER_SIZE = 128
XYZ_DIMS = 3 + 3 * 2 * NUM_ENCODING_FUNCTIONS          # 39
VIEWDIR_DIMS = 3 + 3 * 2 * NUM_ENCODING_FUNCTIONS      # 39 (use_viewdirs=True)
D_IN = XYZ_DIMS + VIEWDIR_DIMS                         # 78
D_OUT = 4


def _round_up(v, m):
    return ((v + m - 1) // m) * m


def _nerf_mlp_kernel(x_ref, w1_ref, b1_ref, w2_ref, b2_ref, w3_ref, b3_ref,
                     o_ref):
    # x tile arrives as f32 (tile_n, 78); cast to bf16 in VMEM for the MXU.
    x = x_ref[...].astype(jnp.bfloat16)
    # layer1 + ReLU (f32 accumulation, f32 bias/ReLU)
    h = jnp.dot(x, w1_ref[...], preferred_element_type=jnp.float32) + b1_ref[...]
    h = jnp.maximum(h, 0.0)
    # layer2 + ReLU
    h = jnp.dot(h.astype(jnp.bfloat16), w2_ref[...],
                preferred_element_type=jnp.float32) + b2_ref[...]
    h = jnp.maximum(h, 0.0)
    # layer3: full 128-wide MXU matmul (w3 lane-padded with zero columns),
    # then store only the 4 real output lanes (narrow masked store; HBM win).
    out_full = jnp.dot(h.astype(jnp.bfloat16), w3_ref[...],
                       preferred_element_type=jnp.float32)      # (tile_n, 128)
    out = out_full[:, :D_OUT] + b3_ref[...]                      # (tile_n, 4)
    o_ref[...] = out.astype(o_ref.dtype)


def prepare_params(params):
    """One-time weight prep: bf16 casts (halves weight DMA) + w3 lane padding.

    Weights are stored [in, out] so the kernel computes x @ W directly.
    """
    w3p = jnp.zeros((FILTER_SIZE, FILTER_SIZE), jnp.bfloat16)
    w3p = w3p.at[:, :D_OUT].set(params["w3"].astype(jnp.bfloat16))
    return dict(
        w1=params["w1"].astype(jnp.bfloat16),                        # (78, 128)
        b1=params["b1"].astype(jnp.float32).reshape(1, FILTER_SIZE), # (1, 128)
        w2=params["w2"].astype(jnp.bfloat16),                        # (128, 128)
        b2=params["b2"].astype(jnp.float32).reshape(1, FILTER_SIZE), # (1, 128)
        w3=w3p,                                                      # (128, 128)
        b3=params["b3"].astype(jnp.float32).reshape(1, D_OUT),       # (1, 4)
    )


def very_tiny_nerf_forward(x, prepared, *, tile_n=None):
    """x: [N, 78] float32. prepared: output of prepare_params()."""
    n, d_in = x.shape
    assert d_in == D_IN

    if tile_n is None:
        # Aim for >= 4 grid steps (megacore sharding + load balance) but cap the
        # tile at 4096 rows; always a multiple of 128 (>= 8 sublane rule).
        tile_n = max(128, min(4096, _round_up(pl.cdiv(n, 4), 128)))
    assert tile_n % 8 == 0, "tile_n must be a multiple of 8"

    n_blocks = pl.cdiv(n, tile_n)   # partial edge block is fine (rows independent)

    full = lambda shape: pl.BlockSpec(shape, lambda i: (0, 0))

    out = pl.pallas_call(
        _nerf_mlp_kernel,
        out_shape=jax.ShapeDtypeStruct((n, D_OUT), jnp.float32),
        grid_spec=pltpu.PrefetchScalarGridSpec(
            num_scalar_prefetch=0,
            grid=(n_blocks,),
            in_specs=[
                pl.BlockSpec((tile_n, D_IN), lambda i: (i, 0)),
                full(prepared["w1"].shape), full(prepared["b1"].shape),
                full(prepared["w2"].shape), full(prepared["b2"].shape),
                full(prepared["w3"].shape), full(prepared["b3"].shape),
            ],
            out_specs=pl.BlockSpec((tile_n, D_OUT), lambda i: (i, 0)),
        ),
        compiler_params=pltpu.CompilerParams(
            dimension_semantics=("parallel",)),
    )(x, prepared["w1"], prepared["b1"], prepared["w2"], prepared["b2"],
      prepared["w3"], prepared["b3"])

    return out.astype(x.dtype)


def init_params(key):
    """Deterministic init mimicking torch.nn.Linear (uniform +-1/sqrt(fan_in)).

    Weights are stored transposed vs. PyTorch ([in, out]).
    """
    ks = jax.random.split(key, 6)

    def linear(kw, kb, fan_in, fan_out):
        bound = 1.0 / math.sqrt(fan_in)
        w = jax.random.uniform(kw, (fan_in, fan_out), jnp.float32,
                               minval=-bound, maxval=bound)
        b = jax.random.uniform(kb, (1, fan_out), jnp.float32,
                               minval=-bound, maxval=bound)
        return w, b

    w1, b1 = linear(ks[0], ks[1], D_IN, FILTER_SIZE)
    w2, b2 = linear(ks[2], ks[3], FILTER_SIZE, FILTER_SIZE)
    w3, b3 = linear(ks[4], ks[5], FILTER_SIZE, D_OUT)
    return dict(w1=w1, b1=b1, w2=w2, b2=b2, w3=w3, b3=b3)


def reference_forward_bf16(x, p):
    """Reference matching the kernel numerics: bf16 operands, f32 accumulation."""
    bf = lambda a: a.astype(jnp.bfloat16).astype(jnp.float32)
    h = jnp.maximum(bf(x) @ bf(p["w1"]) + p["b1"], 0.0)
    h = jnp.maximum(bf(h) @ bf(p["w2"]) + p["b2"], 0.0)
    return bf(h) @ bf(p["w3"]) + p["b3"]


def reference_forward_f32(x, p):
    h = jnp.maximum(x @ p["w1"] + p["b1"], 0.0)
    h = jnp.maximum(h @ p["w2"] + p["b2"], 0.0)
    return h @ p["w3"] + p["b3"]


if __name__ == "__main__":
    key = jax.random.PRNGKey(0)
    k_params, k_x = jax.random.split(key)

    params = init_params(k_params)
    prepared = prepare_params(params)

    # Small, non-tile-multiple batch of encoded NeRF samples (exercises the
    # adaptive tile choice — tile_n=256, 3 grid steps, partial last block).
    N = 600
    x = jax.random.normal(k_x, (N, D_IN), jnp.float32)

    out = very_tiny_nerf_forward(x, prepared)
    out = jax.block_until_ready(out)
    assert out.shape == (N, D_OUT)

    # Exact-numerics reference (bf16 operands, f32 accumulation) — authoritative.
    ref_bf16 = reference_forward_bf16(x, params)
    assert jnp.allclose(out, ref_bf16, atol=1e-2, rtol=1e-2)

    # Loose check against the full-f32 PyTorch-equivalent forward.
    ref_f32 = reference_forward_f32(x, params)
    assert jnp.allclose(out, ref_f32, atol=5e-2, rtol=5e-2)

    print("KERNEL_OK")
</pallas_src>

<mosaic_0001>
module attributes {stable_mosaic.version = 11 : i64} {
  func.func @_nerf_mlp_kernel(%arg0: i32, %arg1: memref<256x78xf32, #tpu.memory_space<vmem>>, %arg2: memref<78x128xbf16, #tpu.memory_space<vmem>>, %arg3: memref<1x128xf32, #tpu.memory_space<vmem>>, %arg4: memref<128x128xbf16, #tpu.memory_space<vmem>>, %arg5: memref<1x128xf32, #tpu.memory_space<vmem>>, %arg6: memref<128x128xbf16, #tpu.memory_space<vmem>>, %arg7: memref<1x4xf32, #tpu.memory_space<vmem>>, %arg8: memref<256x4xf32, #tpu.memory_space<vmem>>) attributes {dimension_semantics = [#tpu.dimension_semantics<parallel>], iteration_bounds = array<i64: 3>, scalar_prefetch = 0 : i64, scratch_operands = 0 : i64, tpu.core_type = #tpu.core_type<tc>, window_params = [{transform_indices = @transform_0, window_bounds = array<i64: 256, 78>}, {pipeline_mode = #tpu.pipeline_mode<synchronous>, transform_indices = @transform_1, window_bounds = array<i64: 78, 128>}, {pipeline_mode = #tpu.pipeline_mode<synchronous>, transform_indices = @transform_2, window_bounds = array<i64: 1, 128>}, {pipeline_mode = #tpu.pipeline_mode<synchronous>, transform_indices = @transform_3, window_bounds = array<i64: 128, 128>}, {pipeline_mode = #tpu.pipeline_mode<synchronous>, transform_indices = @transform_4, window_bounds = array<i64: 1, 128>}, {pipeline_mode = #tpu.pipeline_mode<synchronous>, transform_indices = @transform_5, window_bounds = array<i64: 128, 128>}, {pipeline_mode = #tpu.pipeline_mode<synchronous>, transform_indices = @transform_6, window_bounds = array<i64: 1, 4>}, {transform_indices = @transform_7, window_bounds = array<i64: 256, 4>}]} {
    %c0 = arith.constant 0 : index
    %c0_0 = arith.constant 0 : index
    %0 = vector.load %arg1[%c0, %c0_0] : memref<256x78xf32, #tpu.memory_space<vmem>>, vector<256x78xf32>
    %1 = arith.truncf %0 : vector<256x78xf32> to vector<256x78xbf16>
    %c0_1 = arith.constant 0 : index
    %c0_2 = arith.constant 0 : index
    %2 = vector.load %arg2[%c0_1, %c0_2] : memref<78x128xbf16, #tpu.memory_space<vmem>>, vector<78x128xbf16>
    %cst = arith.constant dense<0.000000e+00> : vector<256x128xf32>
    %3 = tpu.matmul %1, %2, %cst {dimension_numbers = #tpu.dot_dimension_numbers<[1], [0], [0], [1], [0, 0, 1, 1], [], []>} : vector<256x78xbf16>, vector<78x128xbf16>, vector<256x128xf32> -> vector<256x128xf32>
    %c0_3 = arith.constant 0 : index
    %c0_4 = arith.constant 0 : index
    %4 = vector.load %arg3[%c0_3, %c0_4] : memref<1x128xf32, #tpu.memory_space<vmem>>, vector<1x128xf32>
    %5 = vector.broadcast %4 : vector<1x128xf32> to vector<256x128xf32>
    %6 = arith.addf %3, %5 : vector<256x128xf32>
    %cst_5 = arith.constant 0.000000e+00 : f32
    %7 = vector.broadcast %cst_5 : f32 to vector<256x128xf32>
    %8 = arith.maximumf %6, %7 : vector<256x128xf32>
    %9 = arith.truncf %8 : vector<256x128xf32> to vector<256x128xbf16>
    %c0_6 = arith.constant 0 : index
    %c0_7 = arith.constant 0 : index
    %10 = vector.load %arg4[%c0_6, %c0_7] : memref<128x128xbf16, #tpu.memory_space<vmem>>, vector<128x128xbf16>
    %cst_8 = arith.constant dense<0.000000e+00> : vector<256x128xf32>
    %11 = tpu.matmul %9, %10, %cst_8 {dimension_numbers = #tpu.dot_dimension_numbers<[1], [0], [0], [1], [0, 0, 1, 1], [], []>} : vector<256x128xbf16>, vector<128x128xbf16>, vector<256x128xf32> -> vector<256x128xf32>
    %c0_9 = arith.constant 0 : index
    %c0_10 = arith.constant 0 : index
    %12 = vector.load %arg5[%c0_9, %c0_10] : memref<1x128xf32, #tpu.memory_space<vmem>>, vector<1x128xf32>
    %13 = vector.broadcast %12 : vector<1x128xf32> to vector<256x128xf32>
    %14 = arith.addf %11, %13 : vector<256x128xf32>
    %cst_11 = arith.constant 0.000000e+00 : f32
    %15 = vector.broadcast %cst_11 : f32 to vector<256x128xf32>
    %16 = arith.maximumf %14, %15 : vector<256x128xf32>
    %17 = arith.truncf %16 : vector<256x128xf32> to vector<256x128xbf16>
    %c0_12 = arith.constant 0 : index
    %c0_13 = arith.constant 0 : index
    %18 = vector.load %arg6[%c0_12, %c0_13] : memref<128x128xbf16, #tpu.memory_space<vmem>>, vector<128x128xbf16>
    %cst_14 = arith.constant dense<0.000000e+00> : vector<256x128xf32>
    %19 = tpu.matmul %17, %18, %cst_14 {dimension_numbers = #tpu.dot_dimension_numbers<[1], [0], [0], [1], [0, 0, 1, 1], [], []>} : vector<256x128xbf16>, vector<128x128xbf16>, vector<256x128xf32> -> vector<256x128xf32>
    %20 = vector.extract_strided_slice %19 {offsets = [0, 0], sizes = [256, 4], strides = [1, 1]} : vector<256x128xf32> to vector<256x4xf32>
    %c0_15 = arith.constant 0 : index
    %c0_16 = arith.constant 0 : index
    %21 = vector.load %arg7[%c0_15, %c0_16] : memref<1x4xf32, #tpu.memory_space<vmem>>, vector<1x4xf32>
    %22 = vector.broadcast %21 : vector<1x4xf32> to vector<256x4xf32>
    %23 = arith.addf %20, %22 : vector<256x4xf32>
    %c0_17 = arith.constant 0 : index
    %c0_18 = arith.constant 0 : index
    %24 = vector.load %arg8[%c0_17, %c0_18] : memref<256x4xf32, #tpu.memory_space<vmem>>, vector<256x4xf32>
    tpu.vector_store %arg8[%c0_17, %c0_18], %23 {strides = array<i32>} : memref<256x4xf32, #tpu.memory_space<vmem>>, vector<256x4xf32>,
    return
  }
  func.func @transform_0(%arg0: i32) -> (i32, i32) {
    %c0_i32 = arith.constant 0 : i32
    %c0_i32_0 = arith.constant 0 : i32
    return %arg0, %c0_i32 : i32, i32
  }
  func.func @transform_1(%arg0: i32) -> (i32, i32) {
    %c0_i32 = arith.constant 0 : i32
    %c0_i32_0 = arith.constant 0 : i32
    %c0_i32_1 = arith.constant 0 : i32
    return %c0_i32, %c0_i32_0 : i32, i32
  }
  func.func @transform_2(%arg0: i32) -> (i32, i32) {
    %c0_i32 = arith.constant 0 : i32
    %c0_i32_0 = arith.constant 0 : i32
    %c0_i32_1 = arith.constant 0 : i32
    return %c0_i32, %c0_i32_0 : i32, i32
  }
  func.func @transform_3(%arg0: i32) -> (i32, i32) {
    %c0_i32 = arith.constant 0 : i32
    %c0_i32_0 = arith.constant 0 : i32
    %c0_i32_1 = arith.constant 0 : i32
    return %c0_i32, %c0_i32_0 : i32, i32
  }
  func.func @transform_4(%arg0: i32) -> (i32, i32) {
    %c0_i32 = arith.constant 0 : i32
    %c0_i32_0 = arith.constant 0 : i32
    %c0_i32_1 = arith.constant 0 : i32
    return %c0_i32, %c0_i32_0 : i32, i32
  }
  func.func @transform_5(%arg0: i32) -> (i32, i32) {
    %c0_i32 = arith.constant 0 : i32
    %c0_i32_0 = arith.constant 0 : i32
    %c0_i32_1 = arith.constant 0 : i32
    return %c0_i32, %c0_i32_0 : i32, i32
  }
  func.func @transform_6(%arg0: i32) -> (i32, i32) {
    %c0_i32 = arith.constant 0 : i32
    %c0_i32_0 = arith.constant 0 : i32
    %c0_i32_1 = arith.constant 0 : i32
    return %c0_i32, %c0_i32_0 : i32, i32
  }
  func.func @transform_7(%arg0: i32) -> (i32, i32) {
    %c0_i32 = arith.constant 0 : i32
    %c0_i32_0 = arith.constant 0 : i32
    return %arg0, %c0_i32 : i32, i32
  }
}

</mosaic_0001>

<bundles_post_ra>
// kernel: tpu_custom_call.1
= control target key start
LH: loop header
LB: loop body
LE: loop exit
PB: predicated region body
PF: predicated region fallthrough
CT: control target
= control target key end

     0   :  { %s2096_s24 = smov 0   ;;  %s2098_s25 = smov 0   ;;  %s2578_s0 = inlined_call_operand.vmem [shape: f32[600,78], index: 0, kind: input, shape index: {}]   ;;  %s2579_s1 = inlined_call_operand.vmem [shape: bf16[78,128], index: 1, kind: input, shape index: {}]   ;;  %s2580_s2 = inlined_call_operand.vmem [shape: f32[1,128], index: 2, kind: input, shape index: {}]   ;;  %s2581_s3 = inlined_call_operand.vmem [shape: bf16[128,128], index: 3, kind: input, shape index: {}]   ;;  %s2582_s4 = inlined_call_operand.vmem [shape: f32[1,128], index: 4, kind: input, shape index: {}]   ;;  %s2583_s5 = inlined_call_operand.vmem [shape: bf16[128,128], index: 5, kind: input, shape index: {}]   ;;  %s2584_s6 = inlined_call_operand.vmem [shape: f32[1,4], index: 6, kind: input, shape index: {}]   ;;  %s2585_s7 = inlined_call_operand.vmem [shape: f32[600,4], index: 7, kind: output, shape index: {}]  }
   0x1   :  { %s2100_s26 = smov 0  }
   0x2 LB: > { %s2109_s27 = sadd.s32 4294967295, %s2022_s26   ;;  %s2111_s28 = sadd.s32 1, %s2022_s26   ;;  %s2022_s26 = sphi %s2100_s26, %s2594_s26   ;;  %s2018_s25 = sphi %s2098_s25, %s2593_s25   ;;  %s2014_s24 = sphi %s2096_s24, %s2592_s24  }
   0x3   : > { %s173_s29 = ssub.s32 %s2022_s26, %s2111_s28  ;;  %s176_s30 = sadd.s32 1, %s2018_s25 }
   0x4   : > { %p174_p0 = scmp.eq.s32.totalorder %s173_s29, 0  ;;  %p186_p1 = scmp.ne.s32.totalorder %s2018_s25, %s2014_s24 }
   0x5   : > { %p187_p2 = scmp.eq.s32.totalorder %s2109_s27, 2  ;;  %p1576_p3 = scmp.ge.s32.totalorder %s2022_s26, 1 }
   0x6   : > { %s2119_s8 = scalar_select %p174_p0, %s2018_s25, %s176_s30  }
   0x7   : > { %p2121_p4 = por %p187_p2, %p186_p1  ;;  %p246_p5 = scmp.lt.s32.totalorder %s2022_s26, 4 }
   0x9   : > { %p247_p6 = pnand %p1576_p3, %p246_p5 }
   0xa   : > { %v1947_v0 = vld [vmem:[%s2579_s1] sm:$0xff] (!%p247_p6)   ;;  %v1948_v1 = vld [vmem:[%s2579_s1 + $0x8] sm:$0xff] (!%p247_p6)   ;;  %s2132_s14 = sshll.u32 (!%p247_p6), %s2109_s27, 5  ;;  %v1949_v2 = vld [vmem:[%s2579_s1 + $0x10] sm:$0xff] (!%p247_p6)   ;;  %vm395_vm0 = vcmask (!%p247_p6), 637952   ;;  %vm444_vm1 = vcmask (!%p247_p6), 1046528  }
   0xb   : > { %250 = sbr.rel (%p247_p6) target bundleno = 805 (0x325), region = 48  ;;  %1709 = vmatprep.subr.bf16.mxu0 (!%p247_p6), %v1947_v0  ;;  %p286_p7 = scmp.lt.s32.totalorder (!%p247_p6), %s2132_s14, 74  ;;  %1847 = vmatprep.subr.bf16.mxu1 (!%p247_p6), %v1947_v0  ;;  %v1950_v3 = vld [vmem:[%s2579_s1 + $0x18] sm:$0xff] (!%p247_p6)   ;;  %v1951_v7 = vld [vmem:[%s2579_s1 + $0x20] sm:$0x7f] (!%p247_p6)   ;;  %v1953_v25 = vld [vmem:[%s2581_s3 + $0x8] sm:$0xff] (!%p247_p6)  }
   0xc   : > { %1710 = vmatpush3.bf16.msra.mxu0 (!%p247_p6), %v1947_v0  ;;  %1852 = vmatpush3.bf16.msra.mxu1 (!%p247_p6), %v1947_v0  ;;  %v1952_v12 = vld [vmem:[%s2581_s3] sm:$0xff] (!%p247_p6)   ;;  %v446_v17 = vsel (!%p247_p6), %vm444_vm1, %v1951_v7, 0  ;;  %v1954_v34 = vld [vmem:[%s2581_s3 + $0x10] sm:$0xff] (!%p247_p6)   ;;  %v1955_v39 = vld [vmem:[%s2581_s3 + $0x18] sm:$0xff] (!%p247_p6)   ;;  %s278_s13 = sand.u32 (!%p247_p6), 1, %s2014_s24   ;;  %vm1201_vm2 = vcmask (!%p247_p6), 31744  }
   0xd   : > { %1711 = vmatprep.subr.bf16.mxu0 (!%p247_p6), %v1948_v1  ;;  %1848 = vmatprep.subr.bf16.mxu1 (!%p247_p6), %v1948_v1  ;;  %v1956_v48 = vld [vmem:[%s2581_s3 + $0x20] sm:$0xff] (!%p247_p6)   ;;  %v1957_v53 = vld [vmem:[%s2581_s3 + $0x28] sm:$0xff] (!%p247_p6)   ;;  %v1958_v60 = vld [vmem:[%s2581_s3 + $0x30] sm:$0xff] (!%p247_p6)   ;;  %s1577_s15 = sshll.u32 (!%p247_p6), %s278_s13, 8 }
   0xe   : > { %v1959_v61 = vld [vmem:[%s2581_s3 + $0x38] sm:$0xff] (!%p247_p6)   ;;  %v1960_v62 = vld [vmem:[%s2583_s5] sm:$0xff] (!%p247_p6)   ;;  %v1961_v63 = vld [vmem:[%s2583_s5 + $0x8] sm:$0xff] (!%p247_p6)  }
   0xf   : > { %v1962_v0 = vld [vmem:[%s2583_s5 + $0x10] sm:$0xff] (!%p247_p6)  }
  0x10   : > { %1712 = vmatpush3.bf16.msra.mxu0 (!%p247_p6), %v1948_v1  ;;  %1853 = vmatpush3.bf16.msra.mxu1 (!%p247_p6), %v1948_v1  ;;  %v1963_v1 = vld [vmem:[%s2583_s5 + $0x18] sm:$0xff] (!%p247_p6)  }
  0x11   : > { %1713 = vmatprep.subr.bf16.mxu0 (!%p247_p6), %v1949_v2  ;;  %1849 = vmatprep.subr.bf16.mxu1 (!%p247_p6), %v1949_v2 }
  0x12   : > { %s287_s17 = scalar_select %p286_p7, %s2132_s14, 74 }
  0x13   : > { %s1242_s24 = ssub.s32 (%p2121_p4), 75, %s2132_s14  ;;  %s1637_s19 = sshll.u32 (%p2121_p4), %s2109_s27, 8 }
  0x14   : > { %s1579_s18 = sshll.u32 %s287_s17, 3  ;;  %1714 = vmatpush3.bf16.msra.mxu0 %v1949_v2  ;;  %1854 = vmatpush3.bf16.msra.mxu1 %v1949_v2  ;;  %v1964_v2 = vld [vmem:[%s2583_s5 + $0x20] sm:$0xff]   ;;  %p1243_p8 = scmp.lt.s32.totalorder (%p2121_p4), %s1242_s24, 32 }
  0x15   : > { %s2145_s23 = scalar_lea.vmem %s2578_s0, %s1579_s18  ;;  %1715 = vmatprep.subr.bf16.mxu0 %v1950_v3  ;;  %1850 = vmatprep.subr.bf16.mxu1 %v1950_v3  ;;  %s2343_s18 = scalar_lea.vmem [#allocation2], %s1577_s15  }
  0x16   : > { %v301_v4 = vld [vmem:[%s2145_s23] sm:$0xff]  ;;  %v302_v5 = vld [vmem:[%s2145_s23 + $0x8] sm:$0xff]  ;;  %v303_v8 = vld [vmem:[%s2145_s23 + $0x10] sm:$0xff]  ;;  %s2446_s22 = scalar_lea.vmem (%p2121_p4), %s2585_s7, %s1637_s19  }
  0x17   : > { %v333_v6 = vpack.c.bf16 %v302_v5, %v301_v4  ;;  %v304_v9 = vld [vmem:[%s2145_s23 + $0x18] sm:$0xff]  ;;  %v317_v10 = vld [vmem:[%s2145_s23 + $0x80] sm:$0xff]  ;;  %v318_v11 = vld [vmem:[%s2145_s23 + $0x88] sm:$0xff] }
  0x18   : > { %1716 = vmatpush3.bf16.msra.mxu0 %v1950_v3  ;;  %v305_v13 = vld [vmem:[%s2145_s23 + $0x20] sm:$0xff]  ;;  %1855 = vmatpush3.bf16.msra.mxu1 %v1950_v3  ;;  %v341_v14 = vpack.c.bf16 %v318_v11, %v317_v10  ;;  %v319_v15 = vld [vmem:[%s2145_s23 + $0x90] sm:$0xff]  ;;  %v320_v16 = vld [vmem:[%s2145_s23 + $0x98] sm:$0xff]  ;;  %v334_v21 = vpack.c.bf16 %v304_v9, %v303_v8 }
  0x19   : > { %1719 = vmatprep.mubr.msk.bf16.mxu0 %vm395_vm0, %v333_v6  ;;  %1857 = vmatprep.subr.msk.bf16.mxu0 %vm444_vm1, %v1951_v7  ;;  %v306_v18 = vld [vmem:[%s2145_s23 + $0x28] sm:$0xff]  ;;  %v321_v19 = vld [vmem:[%s2145_s23 + $0xa0] sm:$0xff]  ;;  %v342_v22 = vpack.c.bf16 %v320_v16, %v319_v15  ;;  %v307_v26 = vld [vmem:[%s2145_s23 + $0x30] sm:$0xff] }
  0x1a   : > { %1858 = vmatprep.subr.msk.bf16.mxu1 %vm444_vm1, %v1951_v7  ;;  %v322_v20 = vld [vmem:[%s2145_s23 + $0xa8] sm:$0xff]  ;;  %1735 = vmatprep.mubr.msk.bf16.mxu1 %vm395_vm0, %v341_v14  ;;  %v335_v23 = vpack.c.bf16 %v306_v18, %v305_v13  ;;  %v308_v27 = vld [vmem:[%s2145_s23 + $0x38] sm:$0xff]  ;;  %v323_v28 = vld [vmem:[%s2145_s23 + $0xb0] sm:$0xff] }
  0x1b   : > { %v343_v24 = vpack.c.bf16 %v322_v20, %v321_v19  ;;  %v324_v29 = vld [vmem:[%s2145_s23 + $0xb8] sm:$0xff]  ;;  %v309_v30 = vld [vmem:[%s2145_s23 + $0x40] sm:$0xff]  ;;  %v310_v31 = vld [vmem:[%s2145_s23 + $0x48] sm:$0xff]  ;;  %v336_v35 = vpack.c.bf16 %v308_v27, %v307_v26 }
  0x1c   : > { %1718 = vmatpush3.bf16.msra.mxu0 %v446_v17  ;;  %1856 = vmatpush3.bf16.msra.mxu1 %v446_v17  ;;  %v325_v32 = vld [vmem:[%s2145_s23 + $0xc0] sm:$0xff]  ;;  %v326_v33 = vld [vmem:[%s2145_s23 + $0xc8] sm:$0xff]  ;;  %v344_v36 = vpack.c.bf16 %v324_v29, %v323_v28  ;;  %v337_v37 = vpack.c.bf16 %v310_v31, %v309_v30  ;;  %v311_v40 = vld [vmem:[%s2145_s23 + $0x50] sm:$0xff] }
  0x1d   : > { %1751 = vmatprep.subr.bf16.mxu1 %v1952_v12  ;;  %v345_v38 = vpack.c.bf16 %v326_v33, %v325_v32  ;;  %v312_v41 = vld [vmem:[%s2145_s23 + $0x58] sm:$0xff]  ;;  %v313_v42 = vld [vmem:[%s2145_s23 + $0x60] sm:$0xff]  ;;  %v327_v43 = vld [vmem:[%s2145_s23 + $0xd0] sm:$0xff]  ;;  %1799 = vmatprep.subr.bf16.mxu0 %v1960_v62 }
  0x1e   : > { %v328_v44 = vld [vmem:[%s2145_s23 + $0xd8] sm:$0xff]  ;;  %v314_v45 = vld [vmem:[%s2145_s23 + $0x68] sm:$0xff]  ;;  %v329_v46 = vld [vmem:[%s2145_s23 + $0xe0] sm:$0xff]  ;;  %v338_v49 = vpack.c.bf16 %v312_v41, %v311_v40 }
  0x1f   : > { %1720 = vmatmul.mubr.msk.bf16.vlgmr.msra.gmra.mrb[0].mxu0 %vm395_vm0, %v334_v21  ;;  %1736 = vmatmul.mubr.msk.bf16.vlgmr.msra.gmra.mrb[0].mxu1 %vm395_vm0, %v342_v22  ;;  %v330_v47 = vld [vmem:[%s2145_s23 + $0xe8] sm:$0xff]  ;;  %v346_v50 = vpack.c.bf16 %v328_v44, %v327_v43  ;;  %v339_v51 = vpack.c.bf16 %v314_v45, %v313_v42  ;;  %v315_v54 = vld [vmem:[%s2145_s23 + $0x70] sm:$0xff]  ;;  %v316_v55 = vld [vmem:[%s2145_s23 + $0x78] sm:$0xff] }
  0x20   : > { %1723 = vmatprep.mubr.msk.bf16.mxu0 %vm395_vm0, %v335_v23  ;;  %1739 = vmatprep.mubr.msk.bf16.mxu1 %vm395_vm0, %v343_v24  ;;  %v347_v52 = vpack.c.bf16 %v330_v47, %v329_v46  ;;  %v331_v56 = vld [vmem:[%s2145_s23 + $0xf0] sm:$0xff]  ;;  %v332_v57 = vld [vmem:[%s2145_s23 + $0xf8] sm:$0xff]  ;;  %v340_v58 = vpack.c.bf16 %v316_v55, %v315_v54  ;;  %v1965_v3 = vld [vmem:[%s2583_s5 + $0x28] sm:$0xff]  }
  0x21   : > { %1752 = vmatpush3.bf16.msra.mxu1 %v1952_v12  ;;  %v348_v59 = vpack.c.bf16 %v332_v57, %v331_v56  ;;  %1800 = vmatpush3.bf16.msra.mxu0 %v1960_v62  ;;  %v2246_v4 = vld [vmem:[%s2580_s2] ss:$0 sm:$0xff] }
  0x22   : > { %1753 = vmatprep.subr.bf16.mxu1 %v1953_v25  ;;  %1801 = vmatprep.subr.bf16.mxu0 %v1961_v63 }
  0x25   : > { %1754 = vmatpush3.bf16.msra.mxu1 %v1953_v25  ;;  %1802 = vmatpush3.bf16.msra.mxu0 %v1961_v63 }
  0x26   : > { %1755 = vmatprep.subr.bf16.mxu1 %v1954_v34  ;;  %1803 = vmatprep.subr.bf16.mxu0 %v1962_v0 }
  0x27   : > { %1724 = vmatmul.mubr.msk.bf16.gmra.mrb[4].mxu0 %vm395_vm0, %v336_v35  ;;  %1740 = vmatmul.mubr.msk.bf16.gmra.mrb[4].mxu1 %vm395_vm0, %v344_v36 }
  0x28   : > { %1727 = vmatprep.mubr.msk.bf16.mxu0 %vm395_vm0, %v337_v37  ;;  %1743 = vmatprep.mubr.msk.bf16.mxu1 %vm395_vm0, %v345_v38 }
  0x29   : > { %1756 = vmatpush3.bf16.msra.mxu1 %v1954_v34  ;;  %1804 = vmatpush3.bf16.msra.mxu0 %v1962_v0 }
  0x2a   : > { %1757 = vmatprep.subr.bf16.mxu1 %v1955_v39  ;;  %1805 = vmatprep.subr.bf16.mxu0 %v1963_v1 }
  0x2d   : > { %1758 = vmatpush3.bf16.msra.mxu1 %v1955_v39  ;;  %1806 = vmatpush3.bf16.msra.mxu0 %v1963_v1 }
  0x2e   : > { %1759 = vmatprep.subr.bf16.mxu1 %v1956_v48  ;;  %1807 = vmatprep.subr.bf16.mxu0 %v1964_v2 }
  0x2f   : > { %1728 = vmatmul.mubr.msk.bf16.gmra.mrb[8].mxu0 %vm395_vm0, %v338_v49  ;;  %1744 = vmatmul.mubr.msk.bf16.gmra.mrb[8].mxu1 %vm395_vm0, %v346_v50 }
  0x30   : > { %1731 = vmatprep.mubr.msk.bf16.mxu0 %vm395_vm0, %v339_v51  ;;  %1747 = vmatprep.mubr.msk.bf16.mxu1 %vm395_vm0, %v347_v52 }
  0x31   : > { %1760 = vmatpush3.bf16.msra.mxu1 %v1956_v48  ;;  %1808 = vmatpush3.bf16.msra.mxu0 %v1964_v2 }
  0x32   : > { %1761 = vmatprep.subr.bf16.mxu1 %v1957_v53  ;;  %1809 = vmatprep.subr.bf16.mxu0 %v1965_v3 }
  0x35   : > { %1762 = vmatpush3.bf16.msra.mxu1 %v1957_v53  ;;  %1810 = vmatpush3.bf16.msra.mxu0 %v1965_v3 }
  0x36   : > { %1763 = vmatprep.subr.bf16.mxu1 %v1958_v60 }
  0x37   : > { %1732 = vmatmul.mubr.msk.bf16.gmra.mrb[12].mxu0 %vm395_vm0, %v340_v58  ;;  %1748 = vmatmul.mubr.msk.bf16.gmra.mrb[12].mxu1 %vm395_vm0, %v348_v59 }
  0x39   : > { %1764 = vmatpush3.bf16.msra.mxu1 %v1958_v60 }
  0x3a   : > { %1765 = vmatprep.subr.bf16.mxu1 %v1959_v61 }
  0x3d   : > { %1766 = vmatpush3.bf16.msra.mxu1 %v1959_v61 }
  0xf2   : > { %v1721_v5 = vpop.f32.mrb[0].mxu0  ;;  %v1737_v6 = vpop.f32.mrb[0].mxu1 }
  0xf3   : > { %v491_v7 = vadd.f32 %v1721_v5, %v2246_v4  ;;  %v482_v8 = vpop.f32.mrb[1].mxu0  ;;  %v555_v9 = vadd.f32 %v1737_v6, %v2246_v4  ;;  %v546_v10 = vpop.f32.mrb[1].mxu1 }
  0xf4   : > { %v483_v11 = vadd.f32 %v2246_v4, %v482_v8  ;;  %v1722_v12 = vpop.f32.mrb[2].mxu0  ;;  %v547_v13 = vadd.f32 %v2246_v4, %v546_v10  ;;  %v1738_v14 = vpop.f32.mrb[2].mxu1 }
  0xf5   : > { %v494_v15 = vadd.f32 %v1722_v12, %v2246_v4  ;;  %v485_v16 = vpop.f32.mrb[3].mxu0  ;;  %v627_v17 = vmax.f32 %v555_v9, 0.0  ;;  %v558_v18 = vadd.f32 %v1738_v14, %v2246_v4  ;;  %v549_v19 = vpop.f32.mrb[3].mxu1  ;;  %v611_v23 = vmax.f32 %v491_v7, 0.0 }
  0xf6   : > { %v486_v20 = vadd.f32 %v2246_v4, %v485_v16  ;;  %v625_v21 = vmax.f32 %v547_v13, 0.0  ;;  %v550_v22 = vadd.f32 %v2246_v4, %v549_v19  ;;  %v609_v26 = vmax.f32 %v483_v11, 0.0 }
  0xf7   : > { %v612_v24 = vmax.f32 %v494_v15, 0.0  ;;  %v628_v25 = vmax.f32 %v558_v18, 0.0 }
  0xf8   : > { %v610_v27 = vmax.f32 %v486_v20, 0.0  ;;  %v626_v28 = vmax.f32 %v550_v22, 0.0 }
  0xf9   : > { %v642_v29 = vpack.c.bf16 %v612_v24, %v611_v23  ;;  %v2256_v30 = vpack.c.bf16 %v628_v25, %v627_v17 }
  0xfa   : > { %v641_v31 = vpack.c.bf16 %v610_v27, %v609_v26  ;;  %v1725_v32 = vpop.f32.mrb[4].mxu0  ;;  %v2258_v33 = vpack.c.bf16 %v626_v28, %v625_v21  ;;  %v1741_v34 = vpop.f32.mrb[4].mxu1 }
  0xfb   : > { %v507_v35 = vadd.f32 %v1725_v32, %v2246_v4  ;;  %v498_v36 = vpop.f32.mrb[5].mxu0  ;;  %v571_v37 = vadd.f32 %v1741_v34, %v2246_v4  ;;  %v562_v38 = vpop.f32.mrb[5].mxu1 }
  0xfc   : > { %v499_v39 = vadd.f32 %v2246_v4, %v498_v36  ;;  %v1726_v40 = vpop.f32.mrb[6].mxu0  ;;  %1767 = vmatprep.mubr.bf16.mxu1 %v641_v31  ;;  %v563_v41 = vadd.f32 %v2246_v4, %v562_v38  ;;  %v1742_v42 = vpop.f32.mrb[6].mxu1 }
  0xfd   : > { %v510_v43 = vadd.f32 %v1726_v40, %v2246_v4  ;;  %v501_v44 = vpop.f32.mrb[7].mxu0  ;;  %1768 = vmatmul.mubr.bf16.vlgmr.msra.gmra.mrb[16].mxu1 %v642_v29  ;;  %v631_v45 = vmax.f32 %v571_v37, 0.0  ;;  %v574_v46 = vadd.f32 %v1742_v42, %v2246_v4  ;;  %v565_v47 = vpop.f32.mrb[7].mxu1  ;;  %v615_v51 = vmax.f32 %v507_v35, 0.0 }
  0xfe   : > { %v502_v48 = vadd.f32 %v2246_v4, %v501_v44  ;;  %v629_v49 = vmax.f32 %v563_v41, 0.0  ;;  %v566_v50 = vadd.f32 %v2246_v4, %v565_v47  ;;  %v613_v54 = vmax.f32 %v499_v39, 0.0 }
  0xff   : > { %v616_v52 = vmax.f32 %v510_v43, 0.0  ;;  %v632_v53 = vmax.f32 %v574_v46, 0.0 }
 0x100   : > { %v614_v55 = vmax.f32 %v502_v48, 0.0  ;;  %v630_v56 = vmax.f32 %v566_v50, 0.0 }
 0x101   : > { %v644_v57 = vpack.c.bf16 %v616_v52, %v615_v51  ;;  %v2268_v58 = vpack.c.bf16 %v632_v53, %v631_v45 }
 0x102   : > { %v643_v59 = vpack.c.bf16 %v614_v55, %v613_v54  ;;  %v1729_v60 = vpop.f32.mrb[8].mxu0  ;;  %v2270_v61 = vpack.c.bf16 %v630_v56, %v629_v49  ;;  %v1745_v62 = vpop.f32.mrb[8].mxu1 }
 0x103   : > { %v523_v63 = vadd.f32 %v1729_v60, %v2246_v4  ;;  %v514_v0 = vpop.f32.mrb[9].mxu0  ;;  %v587_v1 = vadd.f32 %v1745_v62, %v2246_v4  ;;  %v578_v2 = vpop.f32.mrb[9].mxu1 }
 0x104   : > { %v515_v3 = vadd.f32 %v2246_v4, %v514_v0  ;;  %v1730_v5 = vpop.f32.mrb[10].mxu0  ;;  %1771 = vmatprep.mubr.bf16.mxu1 %v643_v59  ;;  %v579_v6 = vadd.f32 %v2246_v4, %v578_v2  ;;  %v1746_v7 = vpop.f32.mrb[10].mxu1 }
 0x105   : > { %v526_v8 = vadd.f32 %v1730_v5, %v2246_v4  ;;  %v517_v9 = vpop.f32.mrb[11].mxu0  ;;  %1772 = vmatmul.mubr.bf16.gmra.mrb[20].mxu1 %v644_v57  ;;  %v635_v10 = vmax.f32 %v587_v1, 0.0  ;;  %v590_v11 = vadd.f32 %v1746_v7, %v2246_v4  ;;  %v581_v12 = vpop.f32.mrb[11].mxu1  ;;  %v619_v16 = vmax.f32 %v523_v63, 0.0 }
 0x106   : > { %v518_v13 = vadd.f32 %v2246_v4, %v517_v9  ;;  %v633_v14 = vmax.f32 %v579_v6, 0.0  ;;  %v582_v15 = vadd.f32 %v2246_v4, %v581_v12  ;;  %v617_v19 = vmax.f32 %v515_v3, 0.0 }
 0x107   : > { %v620_v17 = vmax.f32 %v526_v8, 0.0  ;;  %v636_v18 = vmax.f32 %v590_v11, 0.0 }
 0x108   : > { %v618_v20 = vmax.f32 %v518_v13, 0.0  ;;  %v634_v21 = vmax.f32 %v582_v15, 0.0 }
 0x109   : > { %v646_v22 = vpack.c.bf16 %v620_v17, %v619_v16  ;;  %v654_v23 = vpack.c.bf16 %v636_v18, %v635_v10 }
 0x10a   : > { %v645_v24 = vpack.c.bf16 %v618_v20, %v617_v19  ;;  %v1733_v25 = vpop.f32.mrb[12].mxu0  ;;  %v653_v26 = vpack.c.bf16 %v634_v21, %v633_v14  ;;  %v1749_v27 = vpop.f32.mrb[12].mxu1 }
 0x10b   : > { %v539_v28 = vadd.f32 %v1733_v25, %v2246_v4  ;;  %v530_v29 = vpop.f32.mrb[13].mxu0  ;;  %v603_v31 = vadd.f32 %v1749_v27, %v2246_v4  ;;  %v594_v32 = vpop.f32.mrb[13].mxu1 }
 0x10c   : > { %v531_v34 = vadd.f32 %v2246_v4, %v530_v29  ;;  %v1734_v35 = vpop.f32.mrb[14].mxu0  ;;  %1775 = vmatprep.mubr.bf16.mxu1 %v645_v24  ;;  %v595_v36 = vadd.f32 %v2246_v4, %v594_v32  ;;  %v1750_v37 = vpop.f32.mrb[14].mxu1 }
 0x10d   : > { %v542_v38 = vadd.f32 %v1734_v35, %v2246_v4  ;;  %v533_v39 = vpop.f32.mrb[15].mxu0  ;;  %1776 = vmatmul.mubr.bf16.gmra.mrb[24].mxu1 %v646_v22  ;;  %v639_v40 = vmax.f32 %v603_v31, 0.0  ;;  %v606_v41 = vadd.f32 %v1750_v37, %v2246_v4  ;;  %v597_v42 = vpop.f32.mrb[15].mxu1  ;;  %v623_v46 = vmax.f32 %v539_v28, 0.0 }
 0x10e   : > { %v534_v43 = vadd.f32 %v2246_v4, %v533_v39  ;;  %v637_v44 = vmax.f32 %v595_v36, 0.0  ;;  %v598_v45 = vadd.f32 %v2246_v4, %v597_v42  ;;  %v621_v49 = vmax.f32 %v531_v34, 0.0  ;;  %v1966_v4 = vld [vmem:[%s2583_s5 + $0x30] sm:$0xff]  }
 0x10f   : > { %v624_v47 = vmax.f32 %v542_v38, 0.0  ;;  %v640_v48 = vmax.f32 %v606_v41, 0.0  ;;  %1811 = vmatprep.subr.bf16.mxu0 %v1966_v4 }
 0x110   : > { %v622_v50 = vmax.f32 %v534_v43, 0.0  ;;  %v638_v51 = vmax.f32 %v598_v45, 0.0  ;;  %1812 = vmatpush3.bf16.msra.mxu0 %v1966_v4 }
 0x111   : > { %v648_v52 = vpack.c.bf16 %v624_v47, %v623_v46  ;;  %v656_v53 = vpack.c.bf16 %v640_v48, %v639_v40 }
 0x112   : > { %v647_v54 = vpack.c.bf16 %v622_v50, %v621_v49  ;;  %v655_v55 = vpack.c.bf16 %v638_v51, %v637_v44 }
 0x114   : > { %1779 = vmatprep.mubr.bf16.mxu1 %v647_v54 }
 0x115   : > { %1780 = vmatmul.mubr.bf16.gmra.mrb[28].mxu1 %v648_v52 }
 0x116   : > { %1783 = vmatprep.mubr.bf16.mxu1 %v2258_v33  ;;  %v1967_v33 = vld [vmem:[%s2583_s5 + $0x38] sm:$0xff]  }
 0x117   : > { %1813 = vmatprep.subr.bf16.mxu0 %v1967_v33 }
 0x118   : > { %1814 = vmatpush3.bf16.msra.mxu0 %v1967_v33 }
 0x11d   : > { %1784 = vmatmul.mubr.bf16.gmra.mrb[32].mxu1 %v2256_v30  ;;  %v2301_v30 = vld [vmem:[%s2582_s4] ss:$0 sm:$0xff] }
 0x11e   : > { %1787 = vmatprep.mubr.bf16.mxu1 %v2270_v61 }
 0x125   : > { %1788 = vmatmul.mubr.bf16.gmra.mrb[36].mxu1 %v2268_v58 }
 0x126   : > { %1791 = vmatprep.mubr.bf16.mxu1 %v653_v26 }
 0x12d   : > { %1792 = vmatmul.mubr.bf16.gmra.mrb[40].mxu1 %v654_v23 }
 0x12e   : > { %1795 = vmatprep.mubr.bf16.mxu1 %v655_v55 }
 0x135   : > { %1796 = vmatmul.mubr.bf16.gmra.mrb[44].mxu1 %v656_v53 }
 0x1d0   : > { %v1769_v56 = vpop.f32.mrb[16].mxu1 }
 0x1d1   : > { %v771_v57 = vadd.f32 %v1769_v56, %v2301_v30  ;;  %v762_v58 = vpop.f32.mrb[17].mxu1 }
 0x1d2   : > { %v763_v59 = vadd.f32 %v2301_v30, %v762_v58  ;;  %v1770_v60 = vpop.f32.mrb[18].mxu1 }
 0x1d3   : > { %v774_v61 = vadd.f32 %v1770_v60, %v2301_v30  ;;  %v765_v62 = vpop.f32.mrb[19].mxu1  ;;  %v891_v0 = vmax.f32 %v771_v57, 0.0 }
 0x1d4   : > { %v766_v63 = vadd.f32 %v2301_v30, %v765_v62  ;;  %v889_v2 = vmax.f32 %v763_v59, 0.0 }
 0x1d5   : > { %v892_v1 = vmax.f32 %v774_v61, 0.0 }
 0x1d6   : > { %v890_v3 = vmax.f32 %v766_v63, 0.0 }
 0x1d7   : > { %v922_v5 = vpack.c.bf16 %v892_v1, %v891_v0 }
 0x1d8   : > { %v921_v6 = vpack.c.bf16 %v890_v3, %v889_v2  ;;  %v1773_v7 = vpop.f32.mrb[20].mxu1 }
 0x1d9   : > { %v787_v8 = vadd.f32 %v1773_v7, %v2301_v30  ;;  %v778_v9 = vpop.f32.mrb[21].mxu1 }
 0x1da   : > { %v779_v10 = vadd.f32 %v2301_v30, %v778_v9  ;;  %v1774_v11 = vpop.f32.mrb[22].mxu1  ;;  %1815 = vmatprep.mubr.bf16.mxu0 %v921_v6 }
 0x1db   : > { %v790_v12 = vadd.f32 %v1774_v11, %v2301_v30  ;;  %v781_v13 = vpop.f32.mrb[23].mxu1  ;;  %1816 = vmatmul.mubr.bf16.vlgmr.msra.gmra.mrb[16].mxu0 %v922_v5  ;;  %v895_v15 = vmax.f32 %v787_v8, 0.0 }
 0x1dc   : > { %v782_v14 = vadd.f32 %v2301_v30, %v781_v13  ;;  %v893_v17 = vmax.f32 %v779_v10, 0.0 }
 0x1dd   : > { %v896_v16 = vmax.f32 %v790_v12, 0.0 }
 0x1de   : > { %v894_v18 = vmax.f32 %v782_v14, 0.0 }
 0x1df   : > { %v924_v19 = vpack.c.bf16 %v896_v16, %v895_v15 }
 0x1e0   : > { %v923_v20 = vpack.c.bf16 %v894_v18, %v893_v17  ;;  %v1777_v21 = vpop.f32.mrb[24].mxu1 }
 0x1e1   : > { %v803_v22 = vadd.f32 %v1777_v21, %v2301_v30  ;;  %v794_v23 = vpop.f32.mrb[25].mxu1 }
 0x1e2   : > { %v795_v24 = vadd.f32 %v2301_v30, %v794_v23  ;;  %v1778_v25 = vpop.f32.mrb[26].mxu1  ;;  %1819 = vmatprep.mubr.bf16.mxu0 %v923_v20 }
 0x1e3   : > { %v806_v26 = vadd.f32 %v1778_v25, %v2301_v30  ;;  %v797_v27 = vpop.f32.mrb[27].mxu1  ;;  %1820 = vmatmul.mubr.bf16.gmra.mrb[20].mxu0 %v924_v19  ;;  %v899_v29 = vmax.f32 %v803_v22, 0.0 }
 0x1e4   : > { %v798_v28 = vadd.f32 %v2301_v30, %v797_v27  ;;  %v897_v32 = vmax.f32 %v795_v24, 0.0 }
 0x1e5   : > { %v900_v31 = vmax.f32 %v806_v26, 0.0 }
 0x1e6   : > { %v898_v34 = vmax.f32 %v798_v28, 0.0 }
 0x1e7   : > { %v926_v35 = vpack.c.bf16 %v900_v31, %v899_v29 }
 0x1e8   : > { %v925_v36 = vpack.c.bf16 %v898_v34, %v897_v32  ;;  %v1781_v37 = vpop.f32.mrb[28].mxu1 }
 0x1e9   : > { %v819_v38 = vadd.f32 %v1781_v37, %v2301_v30  ;;  %v810_v39 = vpop.f32.mrb[29].mxu1 }
 0x1ea   : > { %v811_v40 = vadd.f32 %v2301_v30, %v810_v39  ;;  %v1782_v41 = vpop.f32.mrb[30].mxu1  ;;  %1823 = vmatprep.mubr.bf16.mxu0 %v925_v36 }
 0x1eb   : > { %v822_v42 = vadd.f32 %v1782_v41, %v2301_v30  ;;  %v813_v43 = vpop.f32.mrb[31].mxu1  ;;  %1824 = vmatmul.mubr.bf16.gmra.mrb[24].mxu0 %v926_v35  ;;  %v903_v45 = vmax.f32 %v819_v38, 0.0 }
 0x1ec   : > { %v814_v44 = vadd.f32 %v2301_v30, %v813_v43  ;;  %v901_v47 = vmax.f32 %v811_v40, 0.0 }
 0x1ed   : > { %v904_v46 = vmax.f32 %v822_v42, 0.0 }
 0x1ee   : > { %v902_v48 = vmax.f32 %v814_v44, 0.0  ;;  %v2339_v44 = vld [vmem:[%s2584_s6] ss:$0 sm:$0xff] }
 0x1ef   : > { %v928_v49 = vpack.c.bf16 %v904_v46, %v903_v45 }
 0x1f0   : > { %v927_v50 = vpack.c.bf16 %v902_v48, %v901_v47  ;;  %v1785_v51 = vpop.f32.mrb[32].mxu1 }
 0x1f1   : > { %v835_v52 = vadd.f32 %v1785_v51, %v2301_v30  ;;  %v826_v53 = vpop.f32.mrb[33].mxu1 }
 0x1f2   : > { %v827_v54 = vadd.f32 %v2301_v30, %v826_v53  ;;  %v1786_v55 = vpop.f32.mrb[34].mxu1  ;;  %1827 = vmatprep.mubr.bf16.mxu0 %v927_v50 }
 0x1f3   : > { %v838_v4 = vadd.f32 %v1786_v55, %v2301_v30  ;;  %v829_v33 = vpop.f32.mrb[35].mxu1  ;;  %1828 = vmatmul.mubr.bf16.gmra.mrb[28].mxu0 %v928_v49  ;;  %v907_v57 = vmax.f32 %v835_v52, 0.0 }
 0x1f4   : > { %v830_v56 = vadd.f32 %v2301_v30, %v829_v33  ;;  %v905_v59 = vmax.f32 %v827_v54, 0.0 }
 0x1f5   : > { %v908_v58 = vmax.f32 %v838_v4, 0.0 }
 0x1f6   : > { %v906_v60 = vmax.f32 %v830_v56, 0.0 }
 0x1f7   : > { %v930_v61 = vpack.c.bf16 %v908_v58, %v907_v57 }
 0x1f8   : > { %v929_v62 = vpack.c.bf16 %v906_v60, %v905_v59  ;;  %v1789_v63 = vpop.f32.mrb[36].mxu1 }
 0x1f9   : > { %v851_v0 = vadd.f32 %v1789_v63, %v2301_v30  ;;  %v842_v1 = vpop.f32.mrb[37].mxu1 }
 0x1fa   : > { %v843_v2 = vadd.f32 %v2301_v30, %v842_v1  ;;  %v1790_v3 = vpop.f32.mrb[38].mxu1  ;;  %1831 = vmatprep.mubr.bf16.mxu0 %v929_v62 }
 0x1fb   : > { %v854_v5 = vadd.f32 %v1790_v3, %v2301_v30  ;;  %v845_v6 = vpop.f32.mrb[39].mxu1  ;;  %1832 = vmatmul.mubr.bf16.gmra.mrb[32].mxu0 %v930_v61  ;;  %v911_v8 = vmax.f32 %v851_v0, 0.0 }
 0x1fc   : > { %v846_v7 = vadd.f32 %v2301_v30, %v845_v6  ;;  %v909_v10 = vmax.f32 %v843_v2, 0.0 }
 0x1fd   : > { %v912_v9 = vmax.f32 %v854_v5, 0.0 }
 0x1fe   : > { %v910_v11 = vmax.f32 %v846_v7, 0.0 }
 0x1ff   : > { %v932_v12 = vpack.c.bf16 %v912_v9, %v911_v8 }
 0x200   : > { %v931_v13 = vpack.c.bf16 %v910_v11, %v909_v10  ;;  %v1793_v14 = vpop.f32.mrb[40].mxu1 }
 0x201   : > { %v867_v15 = vadd.f32 %v1793_v14, %v2301_v30  ;;  %v858_v16 = vpop.f32.mrb[41].mxu1 }
 0x202   : > { %v859_v17 = vadd.f32 %v2301_v30, %v858_v16  ;;  %v1794_v18 = vpop.f32.mrb[42].mxu1  ;;  %1835 = vmatprep.mubr.bf16.mxu0 %v931_v13 }
 0x203   : > { %v870_v19 = vadd.f32 %v1794_v18, %v2301_v30  ;;  %v861_v20 = vpop.f32.mrb[43].mxu1  ;;  %1836 = vmatmul.mubr.bf16.gmra.mrb[36].mxu0 %v932_v12  ;;  %v915_v22 = vmax.f32 %v867_v15, 0.0 }
 0x204   : > { %v862_v21 = vadd.f32 %v2301_v30, %v861_v20  ;;  %v913_v24 = vmax.f32 %v859_v17, 0.0 }
 0x205   : > { %v916_v23 = vmax.f32 %v870_v19, 0.0 }
 0x206   : > { %v914_v25 = vmax.f32 %v862_v21, 0.0 }
 0x207   : > { %v934_v26 = vpack.c.bf16 %v916_v23, %v915_v22 }
 0x208   : > { %v933_v27 = vpack.c.bf16 %v914_v25, %v913_v24  ;;  %v1797_v28 = vpop.f32.mrb[44].mxu1 }
 0x209   : > { %v883_v29 = vadd.f32 %v1797_v28, %v2301_v30  ;;  %v874_v31 = vpop.f32.mrb[45].mxu1 }
 0x20a   : > { %v875_v32 = vadd.f32 %v2301_v30, %v874_v31  ;;  %v1798_v34 = vpop.f32.mrb[46].mxu1  ;;  %1839 = vmatprep.mubr.bf16.mxu0 %v933_v27 }
 0x20b   : > { %v886_v35 = vadd.f32 %v1798_v34, %v2301_v30  ;;  %v877_v36 = vpop.f32.mrb[47].mxu1  ;;  %1840 = vmatmul.mubr.bf16.gmra.mrb[40].mxu0 %v934_v26  ;;  %v919_v38 = vmax.f32 %v883_v29, 0.0 }
 0x20c   : > { %v878_v37 = vadd.f32 %v2301_v30, %v877_v36  ;;  %v917_v40 = vmax.f32 %v875_v32, 0.0 }
 0x20d   : > { %v920_v39 = vmax.f32 %v886_v35, 0.0 }
 0x20e   : > { %v918_v41 = vmax.f32 %v878_v37, 0.0 }
 0x20f   : > { %v936_v42 = vpack.c.bf16 %v920_v39, %v919_v38 }
 0x210   : > { %v935_v43 = vpack.c.bf16 %v918_v41, %v917_v40 }
 0x212   : > { %1843 = vmatprep.mubr.bf16.mxu0 %v935_v43 }
 0x213   : > { %1844 = vmatmul.mubr.bf16.gmra.mrb[44].mxu0 %v936_v42 }
 0x2ae   : > { %v1817_v45 = vpop.f32.mrb[16].mxu0 }
 0x2af   : > { %v1171_v46 = vadd.f32 %v1817_v45, %v2339_v44  ;;  %v1035_v30 = vpop.f32.mrb[17].mxu0 }
 0x2b0   : > { %v1169_v47 = vadd.f32 %v2339_v44, %v1035_v30  ;;  %v1818_v48 = vpop.f32.mrb[18].mxu0 }
 0x2b1   : > { %1204 = vst.msk [vmem:[%s2343_s18 + $0x10] sm:$0xff] %vm1201_vm2, %v1171_v46  ;;  %v1172_v49 = vadd.f32 %v1818_v48, %v2339_v44  ;;  %v1038_v50 = vpop.f32.mrb[19].mxu0 }
 0x2b2   : > { %1202 = vst.msk [vmem:[%s2343_s18] sm:$0xff] %vm1201_vm2, %v1169_v47  ;;  %v1170_v51 = vadd.f32 %v2339_v44, %v1038_v50 }
 0x2b3   : > { %1205 = vst.msk [vmem:[%s2343_s18 + $0x18] sm:$0xff] %vm1201_vm2, %v1172_v49 }
 0x2b4   : > { %1203 = vst.msk [vmem:[%s2343_s18 + $0x8] sm:$0xff] %vm1201_vm2, %v1170_v51 }
 0x2b6   : > { %v1821_v52 = vpop.f32.mrb[20].mxu0 }
 0x2b7   : > { %v1175_v53 = vadd.f32 %v1821_v52, %v2339_v44  ;;  %v1051_v54 = vpop.f32.mrb[21].mxu0 }
 0x2b8   : > { %v1173_v55 = vadd.f32 %v2339_v44, %v1051_v54  ;;  %v1822_v4 = vpop.f32.mrb[22].mxu0 }
 0x2b9   : > { %1208 = vst.msk [vmem:[%s2343_s18 + $0x30] sm:$0xff] %vm1201_vm2, %v1175_v53  ;;  %v1176_v33 = vadd.f32 %v1822_v4, %v2339_v44  ;;  %v1054_v56 = vpop.f32.mrb[23].mxu0 }
 0x2ba   : > { %1206 = vst.msk [vmem:[%s2343_s18 + $0x20] sm:$0xff] %vm1201_vm2, %v1173_v55  ;;  %v1174_v57 = vadd.f32 %v2339_v44, %v1054_v56 }
 0x2bb   : > { %1209 = vst.msk [vmem:[%s2343_s18 + $0x38] sm:$0xff] %vm1201_vm2, %v1176_v33 }
 0x2bc   : > { %1207 = vst.msk [vmem:[%s2343_s18 + $0x28] sm:$0xff] %vm1201_vm2, %v1174_v57 }
 0x2be   : > { %v1825_v58 = vpop.f32.mrb[24].mxu0 }
 0x2bf   : > { %v1179_v59 = vadd.f32 %v1825_v58, %v2339_v44  ;;  %v1067_v60 = vpop.f32.mrb[25].mxu0 }
 0x2c0   : > { %v1177_v61 = vadd.f32 %v2339_v44, %v1067_v60  ;;  %v1826_v62 = vpop.f32.mrb[26].mxu0 }
 0x2c1   : > { %1212 = vst.msk [vmem:[%s2343_s18 + $0x50] sm:$0xff] %vm1201_vm2, %v1179_v59  ;;  %v1180_v63 = vadd.f32 %v1826_v62, %v2339_v44  ;;  %v1070_v0 = vpop.f32.mrb[27].mxu0 }
 0x2c2   : > { %1210 = vst.msk [vmem:[%s2343_s18 + $0x40] sm:$0xff] %vm1201_vm2, %v1177_v61  ;;  %v1178_v1 = vadd.f32 %v2339_v44, %v1070_v0 }
 0x2c3   : > { %1213 = vst.msk [vmem:[%s2343_s18 + $0x58] sm:$0xff] %vm1201_vm2, %v1180_v63 }
 0x2c4   : > { %1211 = vst.msk [vmem:[%s2343_s18 + $0x48] sm:$0xff] %vm1201_vm2, %v1178_v1 }
 0x2c6   : > { %v1829_v2 = vpop.f32.mrb[28].mxu0 }
 0x2c7   : > { %v1183_v3 = vadd.f32 %v1829_v2, %v2339_v44  ;;  %v1083_v5 = vpop.f32.mrb[29].mxu0 }
 0x2c8   : > { %v1181_v6 = vadd.f32 %v2339_v44, %v1083_v5  ;;  %v1830_v7 = vpop.f32.mrb[30].mxu0 }
 0x2c9   : > { %1216 = vst.msk [vmem:[%s2343_s18 + $0x70] sm:$0xff] %vm1201_vm2, %v1183_v3  ;;  %v1184_v8 = vadd.f32 %v1830_v7, %v2339_v44  ;;  %v1086_v9 = vpop.f32.mrb[31].mxu0 }
 0x2ca   : > { %1214 = vst.msk [vmem:[%s2343_s18 + $0x60] sm:$0xff] %vm1201_vm2, %v1181_v6  ;;  %v1182_v10 = vadd.f32 %v2339_v44, %v1086_v9 }
 0x2cb   : > { %1217 = vst.msk [vmem:[%s2343_s18 + $0x78] sm:$0xff] %vm1201_vm2, %v1184_v8 }
 0x2cc   : > { %1215 = vst.msk [vmem:[%s2343_s18 + $0x68] sm:$0xff] %vm1201_vm2, %v1182_v10 }
 0x2ce   : > { %v1833_v11 = vpop.f32.mrb[32].mxu0 }
 0x2cf   : > { %v1187_v12 = vadd.f32 %v1833_v11, %v2339_v44  ;;  %v1099_v13 = vpop.f32.mrb[33].mxu0 }
 0x2d0   : > { %v1185_v14 = vadd.f32 %v2339_v44, %v1099_v13  ;;  %v1834_v15 = vpop.f32.mrb[34].mxu0 }
 0x2d1   : > { %1220 = vst.msk [vmem:[%s2343_s18 + $0x90] sm:$0xff] %vm1201_vm2, %v1187_v12  ;;  %v1188_v16 = vadd.f32 %v1834_v15, %v2339_v44  ;;  %v1102_v17 = vpop.f32.mrb[35].mxu0 }
 0x2d2   : > { %1218 = vst.msk [vmem:[%s2343_s18 + $0x80] sm:$0xff] %vm1201_vm2, %v1185_v14  ;;  %v1186_v18 = vadd.f32 %v2339_v44, %v1102_v17 }
 0x2d3   : > { %1221 = vst.msk [vmem:[%s2343_s18 + $0x98] sm:$0xff] %vm1201_vm2, %v1188_v16 }
 0x2d4   : > { %1219 = vst.msk [vmem:[%s2343_s18 + $0x88] sm:$0xff] %vm1201_vm2, %v1186_v18 }
 0x2d6   : > { %v1837_v19 = vpop.f32.mrb[36].mxu0 }
 0x2d7   : > { %v1191_v20 = vadd.f32 %v1837_v19, %v2339_v44  ;;  %v1115_v21 = vpop.f32.mrb[37].mxu0 }
 0x2d8   : > { %v1189_v22 = vadd.f32 %v2339_v44, %v1115_v21  ;;  %v1838_v23 = vpop.f32.mrb[38].mxu0 }
 0x2d9   : > { %1224 = vst.msk [vmem:[%s2343_s18 + $0xb0] sm:$0xff] %vm1201_vm2, %v1191_v20  ;;  %v1192_v24 = vadd.f32 %v1838_v23, %v2339_v44  ;;  %v1118_v25 = vpop.f32.mrb[39].mxu0 }
 0x2da   : > { %1222 = vst.msk [vmem:[%s2343_s18 + $0xa0] sm:$0xff] %vm1201_vm2, %v1189_v22  ;;  %v1190_v26 = vadd.f32 %v2339_v44, %v1118_v25 }
 0x2db   : > { %1225 = vst.msk [vmem:[%s2343_s18 + $0xb8] sm:$0xff] %vm1201_vm2, %v1192_v24 }
 0x2dc   : > { %1223 = vst.msk [vmem:[%s2343_s18 + $0xa8] sm:$0xff] %vm1201_vm2, %v1190_v26 }
 0x2de   : > { %v1841_v27 = vpop.f32.mrb[40].mxu0 }
 0x2df   : > { %v1195_v28 = vadd.f32 %v1841_v27, %v2339_v44  ;;  %v1131_v29 = vpop.f32.mrb[41].mxu0 }
 0x2e0   : > { %v1193_v31 = vadd.f32 %v2339_v44, %v1131_v29  ;;  %v1842_v32 = vpop.f32.mrb[42].mxu0 }
 0x2e1   : > { %1228 = vst.msk [vmem:[%s2343_s18 + $0xd0] sm:$0xff] %vm1201_vm2, %v1195_v28  ;;  %v1196_v34 = vadd.f32 %v1842_v32, %v2339_v44  ;;  %v1134_v35 = vpop.f32.mrb[43].mxu0 }
 0x2e2   : > { %1226 = vst.msk [vmem:[%s2343_s18 + $0xc0] sm:$0xff] %vm1201_vm2, %v1193_v31  ;;  %v1194_v36 = vadd.f32 %v2339_v44, %v1134_v35 }
 0x2e3   : > { %1229 = vst.msk [vmem:[%s2343_s18 + $0xd8] sm:$0xff] %vm1201_vm2, %v1196_v34 }
 0x2e4   : > { %1227 = vst.msk [vmem:[%s2343_s18 + $0xc8] sm:$0xff] %vm1201_vm2, %v1194_v36 }
 0x2e6   : > { %v1845_v37 = vpop.f32.mrb[44].mxu0  ;;  %1240 = sbr.rel (!%p2121_p4) target bundleno = 805 (0x325), region = 52 }
 0x2e7   : > { %v1199_v38 = vadd.f32 %v1845_v37, %v2339_v44  ;;  %v1147_v39 = vpop.f32.mrb[45].mxu0 }
 0x2e8   : > { %v1197_v40 = vadd.f32 %v2339_v44, %v1147_v39  ;;  %v1846_v41 = vpop.f32.mrb[46].mxu0 }
 0x2e9   : > { %1232 = vst.msk [vmem:[%s2343_s18 + $0xf0] sm:$0xff] %vm1201_vm2, %v1199_v38  ;;  %v1200_v42 = vadd.f32 %v1846_v41, %v2339_v44  ;;  %v1150_v43 = vpop.f32.mrb[47].mxu0 }
 0x2ea   : > { %1230 = vst.msk [vmem:[%s2343_s18 + $0xe0] sm:$0xff] %vm1201_vm2, %v1197_v40  ;;  %v1198_v45 = vadd.f32 %v2339_v44, %v1150_v43 }
 0x2eb   : > { %1233 = vst.msk [vmem:[%s2343_s18 + $0xf8] sm:$0xff] %vm1201_vm2, %v1200_v42 }
 0x2ec   : > { %1231 = vst.msk [vmem:[%s2343_s18 + $0xe8] sm:$0xff] %vm1201_vm2, %v1198_v45 }
 0x2ed   : > { %s2596_s24 = smov (!%p1243_p8, %s1242_s24), 32 }
 0x2ee   : > { %s1622_s26 = sshll.u32 %s2596_s24, 7 }
 0x2ef   : > { %p1625_p9 = scmp.eq.s32.totalorder %s1622_s26, 0 }
 0x2f0   : > { %s2452_s29 = sshrl.u32 (!%p1625_p9), %s2596_s24, 5 }
 0x2f1   : > { %1251 = sbr.rel (%p1625_p9) target bundleno = 805 (0x325), region = 56  ;;  %p1626_p10 = scmp.le.s32.totalorder (!%p1625_p9), %s2452_s29, 0 }
 0x2f8   : > { %1529 = sbr.rel (%p1626_p10) target bundleno = 784 (0x310), region = 132  ;;  %s2587_s27 = smov (!%p1626_p10), %s2446_s22 }
 0x2f9   : > { %s2588_s9 = smov (!%p1626_p10), %s2343_s18  ;;  %s2461_s14 = smov (!%p1626_p10), 0  }
 0x2fa   : > { %s2463_s30 = smov (!%p1626_p10), 0  }
 0x2ff LB: >> { %v1375_v44 = vld [vmem:[%s2030_s9] sm:$0xff]  ;;  %v1377_v46 = vld [vmem:[%s2030_s9 + $0x8] sm:$0xff]  ;;  %v1379_v30 = vld [vmem:[%s2030_s9 + $0x10] sm:$0xff]  ;;  %s1439_s23 = sadd.s32 1, %s2034_s14  ;;  %s1369_s30 = sadd.s32 1, %s2038_s30   ;;  %s2038_s30 = sphi %s2463_s30, %s1369_s30   ;;  %s2034_s14 = sphi %s2461_s14, %s2591_s14   ;;  %s2030_s9 = sphi %s2588_s9, %s2590_s9   ;;  %s2026_s27 = sphi %s2587_s27, %s2589_s27  }
 0x300   : >> { %1376 = vst [vmem:[%s2026_s27] sm:$0xff] %v1375_v44  ;;  %1378 = vst [vmem:[%s2026_s27 + $0x8] sm:$0xff] %v1377_v46  ;;  %v1381_v47 = vld [vmem:[%s2030_s9 + $0x18] sm:$0xff]  ;;  %v1383_v48 = vld [vmem:[%s2030_s9 + $0x20] sm:$0xff]  ;;  %p1440_p11 = scmp.ge.s32.totalorder %s1439_s23, %s2452_s29  ;;  %p1368_p12 = scmp.ge.s32.totalorder %s1369_s30, %s2452_s29 }
 0x301   : >> { %1380 = vst [vmem:[%s2026_s27 + $0x10] sm:$0xff] %v1379_v30  ;;  %v1385_v49 = vld [vmem:[%s2030_s9 + $0x28] sm:$0xff]  ;;  %1382 = vst [vmem:[%s2026_s27 + $0x18] sm:$0xff] %v1381_v47  ;;  %v1387_v50 = vld [vmem:[%s2030_s9 + $0x30] sm:$0xff] }
 0x302   : >> { %1384 = vst [vmem:[%s2026_s27 + $0x20] sm:$0xff] %v1383_v48  ;;  %1386 = vst [vmem:[%s2026_s27 + $0x28] sm:$0xff] %v1385_v49  ;;  %v1389_v51 = vld [vmem:[%s2030_s9 + $0x38] sm:$0xff]  ;;  %v1391_v52 = vld [vmem:[%s2030_s9 + $0x40] sm:$0xff]  ;;  %s2598_s23 = smov (%p1440_p11, %s1439_s23), 0 }
 0x303   : >> { %1388 = vst [vmem:[%s2026_s27 + $0x30] sm:$0xff] %v1387_v50  ;;  %1390 = vst [vmem:[%s2026_s27 + $0x38] sm:$0xff] %v1389_v51  ;;  %v1393_v53 = vld [vmem:[%s2030_s9 + $0x48] sm:$0xff]  ;;  %v1395_v54 = vld [vmem:[%s2030_s9 + $0x50] sm:$0xff]  ;;  %s1627_s10 = sshll.u32 %s2598_s23, 8  ;;  %s2591_s14 = smov %s2598_s23 }
 0x304   : >> { %1392 = vst [vmem:[%s2026_s27 + $0x40] sm:$0xff] %v1391_v52  ;;  %v1397_v55 = vld [vmem:[%s2030_s9 + $0x58] sm:$0xff]  ;;  %1394 = vst [vmem:[%s2026_s27 + $0x48] sm:$0xff] %v1393_v53  ;;  %v1399_v4 = vld [vmem:[%s2030_s9 + $0x60] sm:$0xff]  ;;  %s2519_s11 = scalar_lea.vmem %s2343_s18, %s1627_s10 [#allocation2]   ;;  %s1445_s12 = scalar_lea.vmem %s2446_s22, %s1627_s10  }
 0x305   : >> { %1396 = vst [vmem:[%s2026_s27 + $0x50] sm:$0xff] %v1395_v54  ;;  %1398 = vst [vmem:[%s2026_s27 + $0x58] sm:$0xff] %v1397_v55  ;;  %v1401_v33 = vld [vmem:[%s2030_s9 + $0x68] sm:$0xff]  ;;  %v1403_v56 = vld [vmem:[%s2030_s9 + $0x70] sm:$0xff] }
 0x306   : >> { %1400 = vst [vmem:[%s2026_s27 + $0x60] sm:$0xff] %v1399_v4  ;;  %1402 = vst [vmem:[%s2026_s27 + $0x68] sm:$0xff] %v1401_v33  ;;  %v1405_v57 = vld [vmem:[%s2030_s9 + $0x78] sm:$0xff]  ;;  %v1407_v58 = vld [vmem:[%s2030_s9 + $0x80] sm:$0xff] }
 0x307   : >> { %1404 = vst [vmem:[%s2026_s27 + $0x70] sm:$0xff] %v1403_v56  ;;  %v1409_v59 = vld [vmem:[%s2030_s9 + $0x88] sm:$0xff]  ;;  %1406 = vst [vmem:[%s2026_s27 + $0x78] sm:$0xff] %v1405_v57  ;;  %v1411_v60 = vld [vmem:[%s2030_s9 + $0x90] sm:$0xff] }
 0x308   : >> { %1408 = vst [vmem:[%s2026_s27 + $0x80] sm:$0xff] %v1407_v58  ;;  %1410 = vst [vmem:[%s2026_s27 + $0x88] sm:$0xff] %v1409_v59  ;;  %v1413_v61 = vld [vmem:[%s2030_s9 + $0x98] sm:$0xff]  ;;  %v1415_v62 = vld [vmem:[%s2030_s9 + $0xa0] sm:$0xff] }
 0x309   : >> { %1412 = vst [vmem:[%s2026_s27 + $0x90] sm:$0xff] %v1411_v60  ;;  %1414 = vst [vmem:[%s2026_s27 + $0x98] sm:$0xff] %v1413_v61  ;;  %v1417_v63 = vld [vmem:[%s2030_s9 + $0xa8] sm:$0xff]  ;;  %v1419_v0 = vld [vmem:[%s2030_s9 + $0xb0] sm:$0xff]  ;;  %1371 = sbr.rel (!%p1368_p12) target bundleno = 767 (0x2ff), region = 138 }
 0x30a   : >> { %1416 = vst [vmem:[%s2026_s27 + $0xa0] sm:$0xff] %v1415_v62  ;;  %v1421_v1 = vld [vmem:[%s2030_s9 + $0xb8] sm:$0xff]  ;;  %1418 = vst [vmem:[%s2026_s27 + $0xa8] sm:$0xff] %v1417_v63  ;;  %v1423_v2 = vld [vmem:[%s2030_s9 + $0xc0] sm:$0xff] }
 0x30b   : >> { %1420 = vst [vmem:[%s2026_s27 + $0xb0] sm:$0xff] %v1419_v0  ;;  %1422 = vst [vmem:[%s2026_s27 + $0xb8] sm:$0xff] %v1421_v1  ;;  %v1425_v3 = vld [vmem:[%s2030_s9 + $0xc8] sm:$0xff]  ;;  %v1427_v5 = vld [vmem:[%s2030_s9 + $0xd0] sm:$0xff] }
 0x30c   : >> { %1424 = vst [vmem:[%s2026_s27 + $0xc0] sm:$0xff] %v1423_v2  ;;  %1426 = vst [vmem:[%s2026_s27 + $0xc8] sm:$0xff] %v1425_v3  ;;  %v1429_v6 = vld [vmem:[%s2030_s9 + $0xd8] sm:$0xff]  ;;  %v1431_v7 = vld [vmem:[%s2030_s9 + $0xe0] sm:$0xff] }
 0x30d   : >> { %1428 = vst [vmem:[%s2026_s27 + $0xd0] sm:$0xff] %v1427_v5  ;;  %v1433_v8 = vld [vmem:[%s2030_s9 + $0xe8] sm:$0xff]  ;;  %1430 = vst [vmem:[%s2026_s27 + $0xd8] sm:$0xff] %v1429_v6  ;;  %v1435_v9 = vld [vmem:[%s2030_s9 + $0xf0] sm:$0xff] }
 0x30e   : >> { %1432 = vst [vmem:[%s2026_s27 + $0xe0] sm:$0xff] %v1431_v7  ;;  %1434 = vst [vmem:[%s2026_s27 + $0xe8] sm:$0xff] %v1433_v8  ;;  %v1437_v10 = vld [vmem:[%s2030_s9 + $0xf8] sm:$0xff]  ;;  %s2590_s9 = smov %s2519_s11 }
 0x30f   : >> { %1436 = vst [vmem:[%s2026_s27 + $0xf0] sm:$0xff] %v1435_v9  ;;  %1438 = vst [vmem:[%s2026_s27 + $0xf8] sm:$0xff] %v1437_v10  ;;  %s2589_s27 = smov %s1445_s12 }
 0x310 PF: > { %s2560_s13 = sand.u32 31, %s2596_s24   ;;  %s1638_s15 = sshll.u32 %s2452_s29, 8 }
 0x311   : > { %s1450_s16 = scalar_lea.vmem %s2343_s18, %s1638_s15 [#allocation2]   ;;  %s1452_s17 = scalar_lea.vmem %s2446_s22, %s1638_s15  }
 0x312   : > { %p1632_p13 = scmp.le.s32.totalorder %s2560_s13, 0 }
 0x313   : > { %s2040_s19 = smov (!%p1632_p13), %s1452_s17   ;;  %s2044_s20 = smov (!%p1632_p13), %s1450_s16  }
 0x314   : > { %1543 = sbr.rel (%p1632_p13) target bundleno = 805 (0x325), region = 143  ;;  %s2048_s21 = smov (!%p1632_p13), 0  }
 0x315   : > { %s2052_s26 = smov (!%p1632_p13), 0  }
 0x31b LB: >> { %v1462_v11 = vld [vmem:[%s2046_s20] sm:$0xff]  ;;  %s1464_s24 = sadd.s32 1, %s2050_s21  ;;  %s1456_s26 = sadd.s32 1, %s2054_s26   ;;  %s2054_s26 = sphi %s2052_s26, %s1456_s26   ;;  %s2050_s21 = sphi %s2048_s21, %s2049_s21   ;;  %s2046_s20 = sphi %s2044_s20, %s1469_s20   ;;  %s2042_s19 = sphi %s2040_s19, %s1470_s19  }
 0x31c   : >> { %1463 = vst [vmem:[%s2042_s19] sm:$0xff] %v1462_v11  ;;  %p1465_p0 = scmp.ge.s32.totalorder %s1464_s24, %s2560_s13  ;;  %p1455_p1 = scmp.ge.s32.totalorder %s1456_s26, %s2560_s13 }
 0x31e   : >> { %s2600_s24 = smov (%p1465_p0, %s1464_s24), 0  ;;  %1458 = sbr.rel (!%p1455_p1) target bundleno = 795 (0x31b), region = 149 }
 0x31f   : >> { %s1633_s18 = sshll.u32 %s2600_s24, 3  ;;  %s2049_s21 = smov %s2600_s24  }
 0x320   : >> { %s1469_s20 = scalar_lea.vmem %s1450_s16, %s1633_s18 [#allocation2]   ;;  %s1470_s19 = scalar_lea.vmem %s1452_s17, %s1633_s18  }
 0x325 PF: > { %p14_p2 = scmp.ge.s32.totalorder %s2111_s28, 5   ;;  %s2592_s24 = smov %s2018_s25 }
 0x326   : > { %s2593_s25 = smov %s2119_s8  ;;  %s2594_s26 = smov %s2111_s28 }
 0x327   :  { %16 = sbr.rel (!%p14_p2) target bundleno = 2 (0x2), region = 160 }

</bundles_post_ra>
